<compile_context>
chip_gen: v6e
topology: v6e:2x2x1
jax: 0.10.0
libtpu: 0.0.40
codegen_flags: <defaults>
</compile_context>

<pallas_src>
import jax
import jax.numpy as jnp
from jax.experimental import pallas as pl
from jax.experimental.pallas import tpu as pltpu


def _round_up(x: int, m: int) -> int:
    return ((x + m - 1) // m) * m


def _grayscale_kernel(x_ref, o_ref):
    # x_ref: (1, C, TS) block in VMEM ; o_ref: (1, 1, TS)
    C = x_ref.shape[1]
    # Accumulate in f32 only for sub-32-bit inputs; f32 inputs are accumulated
    # directly (avoids a redundant full-block f32 copy).
    acc_dtype = jnp.float32 if jnp.dtype(x_ref.dtype).itemsize < 4 else x_ref.dtype
    acc = x_ref[0, 0:1, :].astype(acc_dtype)          # (1, TS)
    for c in range(1, C):                             # unrolled C-1 VPU adds
        acc = acc + x_ref[0, c:c + 1, :].astype(acc_dtype)
    # Single multiply by the compile-time constant 1/C (weakly-typed scalar).
    o_ref[0] = (acc * (1.0 / C)).astype(o_ref.dtype)


def grayscale_layer(x):
    """Pallas TPU implementation of torch.mean(x, 1, keepdim=True) for NCHW x."""
    N, C, H, W = x.shape
    HW = H * W
    in_bytes = jnp.dtype(x.dtype).itemsize
    out_bytes = in_bytes

    # ---- choose a lane-dense spatial tile (multiple of 128), VMEM-bounded ----
    hw_pad128 = _round_up(HW, 128)
    # Double-buffered input block + double-buffered output block, per element of TS.
    per_elem = 2 * C * in_bytes + 2 * out_bytes
    vmem_budget = 16 * 1024 * 1024                    # safe on v7x (64 MiB phys) too
    max_ts = max(128, ((vmem_budget // per_elem) // 128) * 128)
    target_ts = 512 * 128                             # large tile to amortize per-step overhead
    ts = min(hw_pad128, target_ts, max_ts)

    # Pad the flattened spatial axis so every tile is a full, unmasked 128-lane slab.
    hw_padded = _round_up(HW, ts)
    xf = x.reshape(N, C, HW)
    if hw_padded != HW:
        xf = jnp.pad(xf, ((0, 0), (0, 0), (0, hw_padded - HW)))

    grid = (N, hw_padded // ts)

    out = pl.pallas_call(
        _grayscale_kernel,
        out_shape=jax.ShapeDtypeStruct((N, 1, hw_padded), x.dtype),
        grid_spec=pl.GridSpec(
            grid=grid,
            in_specs=[pl.BlockSpec((1, C, ts), lambda n, s: (n, 0, s))],
            out_specs=pl.BlockSpec((1, 1, ts), lambda n, s: (n, 0, s)),
        ),
        compiler_params=pltpu.CompilerParams(
            dimension_semantics=("parallel", "parallel"),
            vmem_limit_bytes=32 * 1024 * 1024,
        ),
        cost_estimate=pl.CostEstimate(
            flops=N * C * HW,
            transcendentals=0,
            bytes_accessed=N * C * HW * in_bytes + N * HW * out_bytes,
        ),
    )(xf)

    if hw_padded != HW:
        out = out[:, :, :HW]
    return out.reshape(N, 1, H, W)


if __name__ == "__main__":
    key = jax.random.PRNGKey(0)
    # Small NCHW input consistent with an image tensor fed to GrayscaleLayer.
    x = jax.random.normal(key, (2, 4, 16, 16), dtype=jnp.float32)

    out = grayscale_layer(x)
    out = jax.block_until_ready(out)

    # Reference check against plain-JAX mean over the channel axis.
    ref = jnp.mean(x, axis=1, keepdims=True)
    assert out.shape == (2, 1, 16, 16), out.shape
    assert jnp.allclose(out, ref, atol=1e-5, rtol=1e-5), "mismatch vs reference"

    # Also exercise a non-128-aligned spatial size (remainder-padding path).
    x2 = jax.random.normal(jax.random.PRNGKey(1), (1, 3, 13, 17), dtype=jnp.float32)
    out2 = jax.block_until_ready(grayscale_layer(x2))
    ref2 = jnp.mean(x2, axis=1, keepdims=True)
    assert out2.shape == (1, 1, 13, 17), out2.shape
    assert jnp.allclose(out2, ref2, atol=1e-5, rtol=1e-5), "mismatch vs reference (padded path)"

    print("KERNEL_OK")
</pallas_src>

<mosaic_0001>
module attributes {stable_mosaic.version = 11 : i64} {
  func.func @_grayscale_kernel(%arg0: i32, %arg1: i32, %arg2: memref<1x4x256xf32, #tpu.memory_space<vmem>>, %arg3: memref<1x1x256xf32, #tpu.memory_space<vmem>>) attributes {dimension_semantics = [#tpu.dimension_semantics<parallel>, #tpu.dimension_semantics<parallel>], iteration_bounds = array<i64: 2, 1>, scalar_prefetch = 0 : i64, scratch_operands = 0 : i64, tpu.core_type = #tpu.core_type<tc>, window_params = [{transform_indices = @transform_0, window_bounds = array<i64: 1, 4, 256>}, {transform_indices = @transform_1, window_bounds = array<i64: 1, 1, 256>}]} {
    %c0 = arith.constant 0 : index
    %c0_0 = arith.constant 0 : index
    %c0_1 = arith.constant 0 : index
    %0 = vector.load %arg2[%c0, %c0_0, %c0_1] : memref<1x4x256xf32, #tpu.memory_space<vmem>>, vector<1x1x256xf32>
    %1 = vector.shape_cast %0 : vector<1x1x256xf32> to vector<1x256xf32>
    %c0_2 = arith.constant 0 : index
    %c1 = arith.constant 1 : index
    %c0_3 = arith.constant 0 : index
    %2 = vector.load %arg2[%c0_2, %c1, %c0_3] : memref<1x4x256xf32, #tpu.memory_space<vmem>>, vector<1x1x256xf32>
    %3 = vector.shape_cast %2 : vector<1x1x256xf32> to vector<1x256xf32>
    %4 = arith.addf %1, %3 : vector<1x256xf32>
    %c0_4 = arith.constant 0 : index
    %c2 = arith.constant 2 : index
    %c0_5 = arith.constant 0 : index
    %5 = vector.load %arg2[%c0_4, %c2, %c0_5] : memref<1x4x256xf32, #tpu.memory_space<vmem>>, vector<1x1x256xf32>
    %6 = vector.shape_cast %5 : vector<1x1x256xf32> to vector<1x256xf32>
    %7 = arith.addf %4, %6 : vector<1x256xf32>
    %c0_6 = arith.constant 0 : index
    %c3 = arith.constant 3 : index
    %c0_7 = arith.constant 0 : index
    %8 = vector.load %arg2[%c0_6, %c3, %c0_7] : memref<1x4x256xf32, #tpu.memory_space<vmem>>, vector<1x1x256xf32>
    %9 = vector.shape_cast %8 : vector<1x1x256xf32> to vector<1x256xf32>
    %10 = arith.addf %7, %9 : vector<1x256xf32>
    %cst = arith.constant 2.500000e-01 : f32
    %11 = vector.broadcast %cst : f32 to vector<1x256xf32>
    %12 = arith.mulf %10, %11 : vector<1x256xf32>
    %c0_8 = arith.constant 0 : index
    %c0_9 = arith.constant 0 : index
    %c0_10 = arith.constant 0 : index
    %13 = vector.load %arg3[%c0_8, %c0_9, %c0_10] : memref<1x1x256xf32, #tpu.memory_space<vmem>>, vector<1x1x256xf32>
    %14 = vector.shape_cast %13 : vector<1x1x256xf32> to vector<1x256xf32>
    %15 = vector.shape_cast %12 : vector<1x256xf32> to vector<1x1x256xf32>
    tpu.vector_store %arg3[%c0_8, %c0_9, %c0_10], %15 {strides = array<i32>} : memref<1x1x256xf32, #tpu.memory_space<vmem>>, vector<1x1x256xf32>,
    return
  }
  func.func @transform_0(%arg0: i32, %arg1: i32) -> (i32, i32, i32) {
    %c0_i32 = arith.constant 0 : i32
    %c0_i32_0 = arith.constant 0 : i32
    return %arg0, %c0_i32, %arg1 : i32, i32, i32
  }
  func.func @transform_1(%arg0: i32, %arg1: i32) -> (i32, i32, i32) {
    %c0_i32 = arith.constant 0 : i32
    %c0_i32_0 = arith.constant 0 : i32
    return %arg0, %c0_i32, %arg1 : i32, i32, i32
  }
}

</mosaic_0001>

<bundles_post_ra>
// kernel: tpu_custom_call.1
= control target key start
LH: loop header
LB: loop body
LE: loop exit
PB: predicated region body
PF: predicated region fallthrough
CT: control target
= control target key end

     0   :  { %6 = vsyncpa [#allocation3], 0  ;;  %s609_s0 = inlined_call_operand.hbm [shape: f32[2,4,256], index: 0, kind: input, shape index: {}]   ;;  %s610_s1 = inlined_call_operand.hbm [shape: f32[2,1,256], index: 1, kind: output, shape index: {}]  }
   0x1   :  { %8 = vsyncpa [#allocation3 + $0x1], 0 }
   0x2   :  { %9 = vsyncpa [#allocation4], 0 }
   0x3   :  { %11 = vsyncpa [#allocation4 + $0x1], 0  ;;  %s474_s6 = smov 0   ;;  %s476_s7 = smov 0  }
   0x4   :  { %s478_s8 = smov 0   ;;  %s480_s9 = smov 0  }
   0x5   :  { %s482_s10 = smov 0   ;;  %s484_s11 = smov 0  }
   0x6 LB: > { %s270_s12 = sadd.s32 4294967295, %s460_s11   ;;  %s271_s13 = sadd.s32 4294967294, %s460_s11   ;;  %s460_s11 = sphi %s484_s11, %s17_s11   ;;  %s456_s10 = sphi %s482_s10, %s622_s10   ;;  %s452_s9 = sphi %s480_s9, %s621_s9   ;;  %s448_s8 = sphi %s478_s8, %s620_s8   ;;  %s444_s7 = sphi %s476_s7, %s619_s7   ;;  %s440_s6 = sphi %s474_s6, %s618_s6  }
   0x7   : > { %s29_s14 = sadd.s32 1, %s456_s10  ;;  %s38_s15 = sadd.s32 1, %s448_s8 }
   0x8   : > { %p31_p0 = scmp.ge.s32.totalorder %s29_s14, 2  ;;  %p45_p1 = scmp.ne.s32.totalorder %s448_s8, %s444_s7 }
   0x9   : > { %p46_p2 = scmp.eq.s32.totalorder %s460_s11, 0  ;;  %p51_p3 = scmp.ne.s32.totalorder %s444_s7, %s440_s6 }
   0xa   : > { %s624_s14 = smov (%p31_p0, %s29_s14), 0  ;;  %p52_p5 = scmp.eq.s32.totalorder %s270_s12, 0 }
   0xb   : > { %p515_p4 = por %p46_p2, %p45_p1  ;;  %s33_s17 = ssub.s32 %s456_s10, %s624_s14 }
   0xc   : > { %p77_p6 = scmp.eq.s32.totalorder %s270_s12, 1  ;;  %p36_p7 = scmp.eq.s32.totalorder %s33_s17, 0 }
   0xd   : > { %p521_p8 = por %p52_p5, %p51_p3  ;;  %p83_p10 = scmp.eq.s32.totalorder %s271_s13, 1 }
   0xe   : > { %p525_p9 = por %p77_p6, %p45_p1  ;;  %p302_p13 = scmp.lt.s32.totalorder %s460_s11, 2 }
   0xf   : > { %s530_s20 = scalar_select %p36_p7, %s448_s8, %s38_s15  }
  0x10   : > { %p532_p11 = por %p83_p10, %p51_p3  ;;  %s103_s22 = sand.u32 1, %s448_s8  }
  0x11   : > { %s274_s23 = sshll.u32 %s103_s22, 3  ;;  %s288_s24 = sshll.u32 %s456_s10, 7 }
  0x12   : > { %s614_s21 = scalar_select %p532_p11, 1, 0 }
  0x13   : > { %s115_s27 = scalar_lea.hbm %s609_s0, %s288_s24  ;;  %s107_s28 = scalar_lea.vmem [#allocation2], %s274_s23 }
  0x14   : > { %s117_s29 = sshll.u32 %s107_s28, 4  ;;  %p545_p0 = pnand %p302_p13, %p515_p4  ;;  %s118_s29 = int_to_ptr.vmem [resolvable:$true] %s117_s29 }
  0x15   : > { %p277_p1 = scmp.ge.s32.totalorder %s460_s11, 1  ;;  %p122_p2 = scmp.lt.s32.totalorder %s460_s11, 3 }
  0x16   : > { %s104_s2 = scalar_lea.sflag [#allocation3], %s103_s22  ;;  %p354_p3 = pneg %p545_p0 }
  0x17   : > { %s365_s3 = scalar_lea.vmem %s118_s29, 128  ;;  %s462_s4 = smov [#allocation2]  }
  0x18   : > { %p366_p5 = scmp.ne.s32.totalorder %s118_s29, %s365_s3  ;;  %s370_s5 = sshll.u32 %s462_s4, 4  ;;  %s371_s5 = int_to_ptr.vmem [resolvable:$false] %s370_s5 }
  0x19   : > { %s372_s12 = scalar_lea.vmem %s371_s5, 256  ;;  %p373_p10 = scmp.lt.s32.totalorder %s118_s29, %s371_s5 }
  0x1a   : > { %p368_p6 = pnand %p366_p5, %p354_p3  ;;  %p374_p12 = scmp.lt.s32.totalorder %s372_s12, %s365_s3 }
  0x1c   : > { %p369_p7 = pneg %p368_p6  ;;  %p375_p4 = por %p374_p12, %p373_p10 }
  0x1e   : > { %p376_p13 = pnand %p375_p4, %p369_p7 }
  0x20   : > { %379 = shalt.err (!%p376_p13)
}
  0x21   : > { %297 = dma.hbm_to_vmem [thread:$0]  (!%p545_p0), %s115_s27, 128, %s118_s29, %s104_s2  }
  0x22   : > { %p123_p11 = pnand %p277_p1, %p122_p2 }
  0x23   : > { %s560_s13 = sand.u32 (!%p123_p11), 1, %s444_s7  }
  0x24   : > { %126 = sbr.rel (%p123_p11) target bundleno = 67 (0x43), region = 24  ;;  %s278_s15 = sshll.u32 (!%p123_p11), %s560_s13, 3 }
  0x25   : > { %s129_s16 = scalar_lea.sflag (!%p123_p11), [#allocation3], %s560_s13  ;;  %s132_s17 = scalar_lea.vmem (!%p123_p11), [#allocation2], %s278_s15 }
  0x29   : > { %431 = dma.done.wait (%p521_p8), %s129_s16, 128  }
  0x2a   : > { %433 = vsyncadd (%p521_p8), %s129_s16, 4294967168  ;;  %s279_s22 = sshll.u32 %s560_s13, 1  ;;  %v153_v0 = vld [vmem:[%s132_s17] ss:$4 sm:$0x3]  ;;  %v164_v5 = vlaneseq  ;;  %s289_s25 = sshll.u32 %s452_s9, 5 }
  0x2b   : > { %v280_v1 = vld [vmem:[%s132_s17 + $0x1] ss:$4 sm:$0x3]  ;;  %v281_v3 = vld [vmem:[%s132_s17 + $0x2] ss:$4 sm:$0x3]  ;;  %s184_s27 = scalar_lea.hbm %s610_s1, %s289_s25 }
  0x2c   : > { %v156_v2 = vadd.f32 %v280_v1, %v153_v0  ;;  %v282_v4 = vld [vmem:[%s132_s17 + $0x3] ss:$4 sm:$0x3]  ;;  %s150_s23 = scalar_lea.vmem [#allocation5], %s279_s22  ;;  %vm166_vm0 = vcmp.lt.s32.totalorder %v164_v5, 256  ;;  %s170_s28 = scalar_lea.sflag [#allocation4], %s560_s13 }
  0x2d   : > { %s186_s24 = sshll.u32 %s150_s23, 4  ;;  %s463_s30 = smov [#allocation5]   ;;  %s187_s24 = int_to_ptr.vmem [resolvable:$true] %s186_s24 }
  0x2e   : > { %v159_v6 = vadd.f32 %v281_v3, %v156_v2  ;;  %s380_s29 = scalar_lea.vmem %s187_s24, 32  ;;  %s384_s2 = sshll.u32 %s463_s30, 4  ;;  %s385_s2 = int_to_ptr.vmem [resolvable:$false] %s384_s2 }
  0x2f   : > { %p381_p8 = scmp.ne.s32.totalorder %s187_s24, %s380_s29  ;;  %s386_s3 = scalar_lea.vmem %s385_s2, 64 }
  0x30   : > { %v162_v7 = vadd.f32 %v282_v4, %v159_v6  ;;  %p387_p0 = scmp.lt.s32.totalorder %s187_s24, %s385_s2  ;;  %p388_p1 = scmp.lt.s32.totalorder %s386_s3, %s380_s29 }
  0x31   : > { %p382_p11 = pnand %p381_p8, %p525_p9 }
  0x32   : > { %v163_v8 = vmul.f32 0.25, %v162_v7  ;;  %p389_p2 = por %p388_p1, %p387_p0 }
  0x33   : > { %p383_p12 = pneg %p382_p11 }
  0x34   : > { %168 = vst.msk [vmem:[%s150_s23] sm:$0x3] %vm166_vm0, %v163_v8 }
  0x35   : > { %p390_p3 = pnand %p389_p2, %p383_p12 }
  0x37   : > { %393 = shalt.err (!%p390_p3)
}
  0x38   : > { %s394_s9 = scalar_lea.hbm %s184_s27, 32  ;;  %s398_s12 = scalar_lea.hbm %s610_s1, 64 }
  0x39   : > { %p395_p5 = scmp.ne.s32.totalorder %s184_s27, %s394_s9  ;;  %p399_p10 = scmp.lt.s32.totalorder %s184_s27, %s610_s1 }
  0x3a   : > { %p400_p4 = scmp.lt.s32.totalorder %s398_s12, %s394_s9 }
  0x3b   : > { %p396_p6 = pnand %p395_p5, %p525_p9 }
  0x3c   : > { %p401_p13 = por %p400_p4, %p399_p10 }
  0x3d   : > { %p397_p7 = pneg %p396_p6 }
  0x3f   : > { %p402_p8 = pnand %p401_p13, %p397_p7 }
  0x41   : > { %405 = shalt.err (!%p402_p8)
}
  0x42   : > { %292 = dma.vmem_to_hbm [thread:$0]  (%p525_p9), %s187_s24, 32, %s184_s27, %s170_s28  }
  0x43 PF: > { %s198_s16 = sand.u32 1, %s440_s6   ;;  %p616_p11 = scmp.ne.s32.totalorder %s614_s21, 0 }
  0x44   : > { %p617_p12 = scmp.ge.s32.totalorder %s460_s11, 2  ;;  %s199_s17 = scalar_lea.sflag [#allocation4], %s198_s16 }
  0x46   : > { %p299_p0 = pnand %p617_p12, %p616_p11 }
  0x48   : > { %p300_p1 = pneg %p299_p0 }
  0x4a   : > { %435 = dma.done.wait (%p300_p1), %s199_s17, 32  }
  0x4b   : > { %437 = vsyncadd (%p300_p1), %s199_s17, 4294967264  ;;  %s17_s11 = sadd.s32 1, %s460_s11   ;;  %s618_s6 = smov %s444_s7 }
  0x4c   : > { %p14_p2 = scmp.ge.s32.totalorder %s17_s11, 4   ;;  %s619_s7 = smov %s448_s8 }
  0x4d   : > { %s620_s8 = smov %s530_s20  ;;  %s621_s9 = smov %s456_s10 }
  0x4e   : > { %s622_s10 = smov %s624_s14  ;;  %16 = sbr.rel (!%p14_p2) target bundleno = 6 (0x6), region = 72 }
  0x53   :  { %204 = vsyncpa [#allocation3], 1 }
  0x54   :  { %206 = vsyncpa [#allocation3 + $0x1], 1 }
  0x55   :  { %207 = vsyncpa [#allocation4], 1 }
  0x56   :  { %209 = vsyncpa [#allocation4 + $0x1], 1 }

</bundles_post_ra>
